<compile_context>
chip_gen: v7x
topology: tpu7x:2x2x1
jax: 0.10.0
libtpu: 0.0.40
codegen_flags: <defaults>
</compile_context>

<pallas_src>
import functools

import jax
import jax.numpy as jnp
from jax.experimental import pallas as pl
from jax.experimental.pallas import tpu as pltpu


# ----------------------------------------------------------------------------
# Fused kernel: all GraphTripleConv layers, one grid step per layer.
# ----------------------------------------------------------------------------
def _fused_gconv_kernel(
    obj_in_ref,    # (O, D)  f32   layer-0 object vectors
    pred_in_ref,   # (T, D)  f32   layer-0 predicate vectors
    sidx_ref,      # (T, 1)  i32   edges[:, 0]
    oidx_ref,      # (T, 1)  i32   edges[:, 1]
    w1a_s_ref, w1a_p_ref, w1a_o_ref, b1a_ref,          # (D,H)x3, (1,H)
    w1b_s_ref, w1b_p_ref, w1b_o_ref,                   # (H,H), (H,D), (H,H)
    b1b_s_ref, b1b_p_ref, b1b_o_ref,                   # (1,H), (1,D), (1,H)
    w2a_ref, b2a_ref, w2b_ref, b2b_ref,                # (H,H), (1,H), (H,D), (1,D)
    obj_out_ref,   # (O, D)  f32   resident activation + final output
    pred_out_ref,  # (T, D)  f32   resident activation + final output
    *, mm_dtype, approx_recip,
):
    layer = pl.program_id(0)

    # Seed the resident activation buffers on the first layer.  The output
    # BlockSpecs have a constant index_map, so these blocks stay in VMEM for the
    # whole grid and are only written back to HBM after the last layer.
    @pl.when(layer == 0)
    def _():
        obj_out_ref[...] = obj_in_ref[...]
        pred_out_ref[...] = pred_in_ref[...]

    obj = obj_out_ref[...]    # (O, D) f32
    pred = pred_out_ref[...]  # (T, D) f32
    O = obj.shape[0]
    T = pred.shape[0]

    def mm(a, b):  # MXU dot in mm_dtype, f32 accumulation
        return jnp.dot(a.astype(mm_dtype), b.astype(mm_dtype),
                       preferred_element_type=jnp.float32)

    def mm0(a, b):  # contract axis 0 of a with axis 0 of b (no explicit .T)
        return jax.lax.dot_general(
            a.astype(mm_dtype), b.astype(mm_dtype),
            (((0,), (0,)), ((), ())), preferred_element_type=jnp.float32)

    # --- one-hot edge matrices (exact 0/1 values) -----------------------------
    col = jax.lax.broadcasted_iota(jnp.int32, (T, O), 1)
    Sf = (col == sidx_ref[...]).astype(jnp.float32)   # (T, O): subject hits
    Of = (col == oidx_ref[...]).astype(jnp.float32)   # (T, O): object hits

    # --- gather subject / object vectors:  obj_vecs[s_idx] == S @ obj ---------
    cur_s = mm(Sf, obj)   # (T, D) f32
    cur_o = mm(Of, obj)   # (T, D) f32

    # --- net1: Linear(3D->H) + ReLU, Linear(H->2H+D) + ReLU (split weights) ---
    h1 = jnp.maximum(
        mm(cur_s, w1a_s_ref[...]) + mm(pred, w1a_p_ref[...])
        + mm(cur_o, w1a_o_ref[...]) + b1a_ref[...], 0.0)              # (T, H)

    new_s = jnp.maximum(mm(h1, w1b_s_ref[...]) + b1b_s_ref[...], 0.0)  # (T, H)
    new_p = jnp.maximum(mm(h1, w1b_p_ref[...]) + b1b_p_ref[...], 0.0)  # (T, D)
    new_o = jnp.maximum(mm(h1, w1b_o_ref[...]) + b1b_o_ref[...], 0.0)  # (T, H)

    # --- 'avg' scatter-add pooling ---------------------------------------------
    # counts as a lane-aligned (1, O) vector via a VPU/XLU reduce (no 1-lane MXU
    # dot), reciprocal on the EUP, normalisation folded into the scatter matrices.
    counts = (Sf + Of).sum(axis=0, keepdims=True)                      # (1, O)
    inv_c = pl.reciprocal(jnp.maximum(counts, 1.0), approx=approx_recip)
    pooled = mm0(Sf * inv_c, new_s) + mm0(Of * inv_c, new_o)           # (O, H)

    # --- net2: Linear(H->H) + ReLU, Linear(H->D) + ReLU -------------------------
    h2 = jnp.maximum(mm(pooled, w2a_ref[...]) + b2a_ref[...], 0.0)     # (O, H)
    new_obj = jnp.maximum(mm(h2, w2b_ref[...]) + b2b_ref[...], 0.0)    # (O, D)

    obj_out_ref[...] = new_obj.astype(obj_out_ref.dtype)
    pred_out_ref[...] = new_p.astype(pred_out_ref.dtype)


# ----------------------------------------------------------------------------
# Host-side parameter plumbing: stack layers, split concat/slice boundaries.
# ----------------------------------------------------------------------------
def _stack_layer_params(params, Din, H, Dout, mm_dtype):
    st = lambda name: jnp.stack([p[name] for p in params], axis=0)
    c = lambda x: x.astype(mm_dtype)          # weights in matmul dtype
    w1a, b1a = st("w1a"), st("b1a")           # (L, 3D, H), (L, 1, H)
    w1b, b1b = st("w1b"), st("b1b")           # (L, H, 2H+D), (L, 1, 2H+D)
    return dict(
        w1a_s=c(w1a[:, :Din, :]), w1a_p=c(w1a[:, Din:2 * Din, :]),
        w1a_o=c(w1a[:, 2 * Din:, :]), b1a=b1a,
        w1b_s=c(w1b[:, :, :H]), w1b_p=c(w1b[:, :, H:H + Dout]),
        w1b_o=c(w1b[:, :, H + Dout:]),
        b1b_s=b1b[:, :, :H], b1b_p=b1b[:, :, H:H + Dout],
        b1b_o=b1b[:, :, H + Dout:],
        w2a=c(st("w2a")), b2a=st("b2a"), w2b=c(st("w2b")), b2b=st("b2b"))


@functools.partial(jax.jit, static_argnames=("matmul_dtype",))
def graph_triple_conv_net(obj_vecs, pred_vecs, edges, params, *,
                          matmul_dtype=jnp.bfloat16):
    """GraphTripleConvNet.forward as a single fused pallas_call."""
    O, Din = obj_vecs.shape
    T, _ = pred_vecs.shape
    L = len(params)
    H = params[0]["w1a"].shape[1]
    Dout = params[0]["w2b"].shape[1]
    assert Dout == Din, "GraphTripleConvNet uses output_dim == input_dim"

    s_idx = edges[:, 0:1].astype(jnp.int32)   # (T, 1)
    o_idx = edges[:, 1:2].astype(jnp.int32)   # (T, 1)
    w = _stack_layer_params(params, Din, H, Dout, matmul_dtype)

    def const2(shape):                        # same block every layer (fetched once)
        return pl.BlockSpec(shape, lambda l: (0, 0))

    def lspec(d0, d1, buffered=False):        # per-layer slab of a stacked tensor
        if buffered:
            return pl.BlockSpec((None, d0, d1), lambda l: (l, 0, 0),
                                pipeline_mode=pl.Buffered(2))
        return pl.BlockSpec((None, d0, d1), lambda l: (l, 0, 0))

    in_specs = [
        const2((O, Din)), const2((T, Din)), const2((T, 1)), const2((T, 1)),
        lspec(Din, H, True), lspec(Din, H, True), lspec(Din, H, True), lspec(1, H),
        lspec(H, H, True), lspec(H, Dout, True), lspec(H, H, True),
        lspec(1, H), lspec(1, Dout), lspec(1, H),
        lspec(H, H, True), lspec(1, H), lspec(H, Dout, True), lspec(1, Dout),
    ]
    # Constant index maps => obj/pred activations stay resident in VMEM across
    # the whole layer grid and are written back to HBM only at the end.
    out_specs = (pl.BlockSpec((O, Dout), lambda l: (0, 0)),
                 pl.BlockSpec((T, Dout), lambda l: (0, 0)))

    kernel = functools.partial(
        _fused_gconv_kernel, mm_dtype=matmul_dtype,
        approx_recip=(matmul_dtype != jnp.float32))

    return pl.pallas_call(
        kernel,
        grid=(L,),
        in_specs=in_specs,
        out_specs=out_specs,
        out_shape=(jax.ShapeDtypeStruct((O, Dout), jnp.float32),
                   jax.ShapeDtypeStruct((T, Dout), jnp.float32)),
        compiler_params=pltpu.CompilerParams(
            dimension_semantics=("arbitrary",),     # layers are sequential
            vmem_limit_bytes=32 * 1024 * 1024),
    )(obj_vecs, pred_vecs, s_idx, o_idx,
      w["w1a_s"], w["w1a_p"], w["w1a_o"], w["b1a"],
      w["w1b_s"], w["w1b_p"], w["w1b_o"], w["b1b_s"], w["b1b_p"], w["b1b_o"],
      w["w2a"], w["b2a"], w["w2b"], w["b2b"])


# ----------------------------------------------------------------------------
# Deterministic parameter construction (matching the nn.Module shapes)
# ----------------------------------------------------------------------------
def make_params(key, input_dim, hidden_dim, num_layers):
    Din, H = input_dim, hidden_dim
    Dout = Din  # output_dim defaults to input_dim
    layers = []
    for _ in range(num_layers):
        ks = jax.random.split(key, 9)
        key = ks[0]

        def lin(k, fan_in, fan_out):
            # kaiming-normal-style init; weights stored as (in, out).
            w = jax.random.normal(k, (fan_in, fan_out), jnp.float32) * jnp.sqrt(2.0 / fan_in)
            b = jnp.zeros((1, fan_out), jnp.float32)
            return w, b

        w1a, b1a = lin(ks[1], 3 * Din, H)
        w1b, b1b = lin(ks[2], H, 2 * H + Dout)
        w2a, b2a = lin(ks[3], H, H)
        w2b, b2b = lin(ks[4], H, Dout)
        layers.append(dict(w1a=w1a, b1a=b1a, w1b=w1b, b1b=b1b,
                           w2a=w2a, b2a=b2a, w2b=w2b, b2b=b2b))
    return layers


# ----------------------------------------------------------------------------
# Pure-JAX f32 reference (mirrors the PyTorch forward) for correctness checks
# ----------------------------------------------------------------------------
def _gconv_ref(obj, pred, edges, p):
    s = edges[:, 0]
    o = edges[:, 1]
    H = p["w1a"].shape[1]
    Dout = p["w2b"].shape[1]
    cur_t = jnp.concatenate([obj[s], pred, obj[o]], axis=1)
    h1 = jax.nn.relu(cur_t @ p["w1a"] + p["b1a"])
    new_t = jax.nn.relu(h1 @ p["w1b"] + p["b1b"])
    new_s = new_t[:, :H]
    new_p = new_t[:, H:H + Dout]
    new_o = new_t[:, H + Dout:2 * H + Dout]
    O = obj.shape[0]
    pooled = jnp.zeros((O, H), jnp.float32).at[s].add(new_s).at[o].add(new_o)
    counts = jnp.zeros((O,), jnp.float32).at[s].add(1.0).at[o].add(1.0)
    counts = jnp.maximum(counts, 1.0)
    pooled = pooled / counts[:, None]
    h2 = jax.nn.relu(pooled @ p["w2a"] + p["b2a"])
    new_obj = jax.nn.relu(h2 @ p["w2b"] + p["b2b"])
    return new_obj, new_p


def _ref_net(obj, pred, edges, params):
    for p in params:
        obj, pred = _gconv_ref(obj, pred, edges, p)
    return obj, pred


# ----------------------------------------------------------------------------
if __name__ == "__main__":
    # Small shapes: O objects, T triples (edges), feature dim Din, hidden H.
    O, T, Din, H, num_layers = 8, 16, 32, 64, 2

    key = jax.random.PRNGKey(0)
    k_obj, k_pred, k_edge, k_par = jax.random.split(key, 4)

    obj_vecs = jax.random.normal(k_obj, (O, Din), jnp.float32)
    pred_vecs = jax.random.normal(k_pred, (T, Din), jnp.float32)
    edges = jax.random.randint(k_edge, (T, 2), 0, O, jnp.int32)
    params = make_params(k_par, Din, H, num_layers)

    ref_obj, ref_pred = _ref_net(obj_vecs, pred_vecs, edges, params)

    # Exact-math check: f32 matmul path against the pure-JAX reference.
    f32_obj, f32_pred = graph_triple_conv_net(
        obj_vecs, pred_vecs, edges, params, matmul_dtype=jnp.float32)
    jax.block_until_ready((f32_obj, f32_pred))
    assert jnp.allclose(f32_obj, ref_obj, rtol=1e-3, atol=1e-3), "f32 obj mismatch"
    assert jnp.allclose(f32_pred, ref_pred, rtol=1e-3, atol=1e-3), "f32 pred mismatch"

    # Performance path: bf16 matmul operands, f32 accumulation / elementwise.
    new_obj, new_pred = graph_triple_conv_net(obj_vecs, pred_vecs, edges, params)
    jax.block_until_ready((new_obj, new_pred))
    assert jnp.allclose(new_obj, ref_obj, rtol=5e-2, atol=5e-2), "bf16 obj mismatch"
    assert jnp.allclose(new_pred, ref_pred, rtol=5e-2, atol=5e-2), "bf16 pred mismatch"

    print("KERNEL_OK")
</pallas_src>

<mosaic_0001>
module attributes {stable_mosaic.version = 11 : i64} {
  func.func @_fused_gconv_kernel(%arg0: i32, %arg1: memref<8x32xf32, #tpu.memory_space<vmem>>, %arg2: memref<16x32xf32, #tpu.memory_space<vmem>>, %arg3: memref<16x1xi32, #tpu.memory_space<vmem>>, %arg4: memref<16x1xi32, #tpu.memory_space<vmem>>, %arg5: memref<1x32x64xf32, #tpu.memory_space<vmem>>, %arg6: memref<1x32x64xf32, #tpu.memory_space<vmem>>, %arg7: memref<1x32x64xf32, #tpu.memory_space<vmem>>, %arg8: memref<1x1x64xf32, #tpu.memory_space<vmem>>, %arg9: memref<1x64x64xf32, #tpu.memory_space<vmem>>, %arg10: memref<1x64x32xf32, #tpu.memory_space<vmem>>, %arg11: memref<1x64x64xf32, #tpu.memory_space<vmem>>, %arg12: memref<1x1x64xf32, #tpu.memory_space<vmem>>, %arg13: memref<1x1x32xf32, #tpu.memory_space<vmem>>, %arg14: memref<1x1x64xf32, #tpu.memory_space<vmem>>, %arg15: memref<1x64x64xf32, #tpu.memory_space<vmem>>, %arg16: memref<1x1x64xf32, #tpu.memory_space<vmem>>, %arg17: memref<1x64x32xf32, #tpu.memory_space<vmem>>, %arg18: memref<1x1x32xf32, #tpu.memory_space<vmem>>, %arg19: memref<8x32xf32, #tpu.memory_space<vmem>>, %arg20: memref<16x32xf32, #tpu.memory_space<vmem>>) attributes {dimension_semantics = [#tpu.dimension_semantics<arbitrary>], iteration_bounds = array<i64: 2>, scalar_prefetch = 0 : i64, scratch_operands = 0 : i64, tpu.core_type = #tpu.core_type<tc>, window_params = [{pipeline_mode = #tpu.pipeline_mode<synchronous>, transform_indices = @transform_0, window_bounds = array<i64: 8, 32>}, {pipeline_mode = #tpu.pipeline_mode<synchronous>, transform_indices = @transform_1, window_bounds = array<i64: 16, 32>}, {pipeline_mode = #tpu.pipeline_mode<synchronous>, transform_indices = @transform_2, window_bounds = array<i64: 16, 1>}, {pipeline_mode = #tpu.pipeline_mode<synchronous>, transform_indices = @transform_3, window_bounds = array<i64: 16, 1>}, {pipeline_mode = #tpu.pipeline_mode<double_buffered>, transform_indices = @transform_4, window_bounds = array<i64: 1, 32, 64>}, {pipeline_mode = #tpu.pipeline_mode<double_buffered>, transform_indices = @transform_5, window_bounds = array<i64: 1, 32, 64>}, {pipeline_mode = #tpu.pipeline_mode<double_buffered>, transform_indices = @transform_6, window_bounds = array<i64: 1, 32, 64>}, {transform_indices = @transform_7, window_bounds = array<i64: 1, 1, 64>}, {pipeline_mode = #tpu.pipeline_mode<double_buffered>, transform_indices = @transform_8, window_bounds = array<i64: 1, 64, 64>}, {pipeline_mode = #tpu.pipeline_mode<double_buffered>, transform_indices = @transform_9, window_bounds = array<i64: 1, 64, 32>}, {pipeline_mode = #tpu.pipeline_mode<double_buffered>, transform_indices = @transform_10, window_bounds = array<i64: 1, 64, 64>}, {transform_indices = @transform_11, window_bounds = array<i64: 1, 1, 64>}, {transform_indices = @transform_12, window_bounds = array<i64: 1, 1, 32>}, {transform_indices = @transform_13, window_bounds = array<i64: 1, 1, 64>}, {pipeline_mode = #tpu.pipeline_mode<double_buffered>, transform_indices = @transform_14, window_bounds = array<i64: 1, 64, 64>}, {transform_indices = @transform_15, window_bounds = array<i64: 1, 1, 64>}, {pipeline_mode = #tpu.pipeline_mode<double_buffered>, transform_indices = @transform_16, window_bounds = array<i64: 1, 64, 32>}, {transform_indices = @transform_17, window_bounds = array<i64: 1, 1, 32>}, {pipeline_mode = #tpu.pipeline_mode<synchronous>, transform_indices = @transform_18, window_bounds = array<i64: 8, 32>}, {pipeline_mode = #tpu.pipeline_mode<synchronous>, transform_indices = @transform_19, window_bounds = array<i64: 16, 32>}]} {
    %c0_i32 = arith.constant 0 : i32
    %0 = arith.cmpi eq, %arg0, %c0_i32 : i32
    %1 = arith.extui %0 : i1 to i32
    %c0_i32_0 = arith.constant 0 : i32
    %2 = arith.cmpi ne, %1, %c0_i32_0 : i32
    scf.if %2 {
      %c0_73 = arith.constant 0 : index
      %c0_74 = arith.constant 0 : index
      %95 = vector.load %arg1[%c0_73, %c0_74] : memref<8x32xf32, #tpu.memory_space<vmem>>, vector<8x32xf32>
      %c0_75 = arith.constant 0 : index
      %c0_76 = arith.constant 0 : index
      %96 = vector.load %arg19[%c0_75, %c0_76] : memref<8x32xf32, #tpu.memory_space<vmem>>, vector<8x32xf32>
      tpu.vector_store %arg19[%c0_75, %c0_76], %95 {strides = array<i32>} : memref<8x32xf32, #tpu.memory_space<vmem>>, vector<8x32xf32>,
      %c0_77 = arith.constant 0 : index
      %c0_78 = arith.constant 0 : index
      %97 = vector.load %arg2[%c0_77, %c0_78] : memref<16x32xf32, #tpu.memory_space<vmem>>, vector<16x32xf32>
      %c0_79 = arith.constant 0 : index
      %c0_80 = arith.constant 0 : index
      %98 = vector.load %arg20[%c0_79, %c0_80] : memref<16x32xf32, #tpu.memory_space<vmem>>, vector<16x32xf32>
      tpu.vector_store %arg20[%c0_79, %c0_80], %97 {strides = array<i32>} : memref<16x32xf32, #tpu.memory_space<vmem>>, vector<16x32xf32>,
    } else {
    }
    %c0 = arith.constant 0 : index
    %c0_1 = arith.constant 0 : index
    %3 = vector.load %arg19[%c0, %c0_1] : memref<8x32xf32, #tpu.memory_space<vmem>>, vector<8x32xf32>
    %c0_2 = arith.constant 0 : index
    %c0_3 = arith.constant 0 : index
    %4 = vector.load %arg20[%c0_2, %c0_3] : memref<16x32xf32, #tpu.memory_space<vmem>>, vector<16x32xf32>
    %5 = tpu.iota {dimensions = array<i32: 1>} : vector<16x8xi32>
    %c0_4 = arith.constant 0 : index
    %c0_5 = arith.constant 0 : index
    %6 = vector.load %arg3[%c0_4, %c0_5] : memref<16x1xi32, #tpu.memory_space<vmem>>, vector<16x1xi32>
    %7 = vector.broadcast %6 : vector<16x1xi32> to vector<16x8xi32>
    %8 = arith.cmpi eq, %5, %7 : vector<16x8xi32>
    %9 = arith.extui %8 : vector<16x8xi1> to vector<16x8xi32>
    %10 = arith.sitofp %9 : vector<16x8xi32> to vector<16x8xf32>
    %c0_6 = arith.constant 0 : index
    %c0_7 = arith.constant 0 : index
    %11 = vector.load %arg4[%c0_6, %c0_7] : memref<16x1xi32, #tpu.memory_space<vmem>>, vector<16x1xi32>
    %12 = vector.broadcast %11 : vector<16x1xi32> to vector<16x8xi32>
    %13 = arith.cmpi eq, %5, %12 : vector<16x8xi32>
    %14 = arith.extui %13 : vector<16x8xi1> to vector<16x8xi32>
    %15 = arith.sitofp %14 : vector<16x8xi32> to vector<16x8xf32>
    %cst = arith.constant dense<0.000000e+00> : vector<16x32xf32>
    %16 = tpu.matmul %10, %3, %cst {dimension_numbers = #tpu.dot_dimension_numbers<[1], [0], [0], [1], [0, 0, 1, 1], [], []>} : vector<16x8xf32>, vector<8x32xf32>, vector<16x32xf32> -> vector<16x32xf32>
    %cst_8 = arith.constant dense<0.000000e+00> : vector<16x32xf32>
    %17 = tpu.matmul %15, %3, %cst_8 {dimension_numbers = #tpu.dot_dimension_numbers<[1], [0], [0], [1], [0, 0, 1, 1], [], []>} : vector<16x8xf32>, vector<8x32xf32>, vector<16x32xf32> -> vector<16x32xf32>
    %c0_9 = arith.constant 0 : index
    %c0_10 = arith.constant 0 : index
    %c0_11 = arith.constant 0 : index
    %18 = vector.load %arg5[%c0_9, %c0_10, %c0_11] : memref<1x32x64xf32, #tpu.memory_space<vmem>>, vector<1x32x64xf32>
    %19 = vector.shape_cast %18 : vector<1x32x64xf32> to vector<32x64xf32>
    %cst_12 = arith.constant dense<0.000000e+00> : vector<16x64xf32>
    %20 = tpu.matmul %16, %19, %cst_12 {dimension_numbers = #tpu.dot_dimension_numbers<[1], [0], [0], [1], [0, 0, 1, 1], [], []>} : vector<16x32xf32>, vector<32x64xf32>, vector<16x64xf32> -> vector<16x64xf32>
    %c0_13 = arith.constant 0 : index
    %c0_14 = arith.constant 0 : index
    %c0_15 = arith.constant 0 : index
    %21 = vector.load %arg6[%c0_13, %c0_14, %c0_15] : memref<1x32x64xf32, #tpu.memory_space<vmem>>, vector<1x32x64xf32>
    %22 = vector.shape_cast %21 : vector<1x32x64xf32> to vector<32x64xf32>
    %cst_16 = arith.constant dense<0.000000e+00> : vector<16x64xf32>
    %23 = tpu.matmul %4, %22, %cst_16 {dimension_numbers = #tpu.dot_dimension_numbers<[1], [0], [0], [1], [0, 0, 1, 1], [], []>} : vector<16x32xf32>, vector<32x64xf32>, vector<16x64xf32> -> vector<16x64xf32>
    %24 = arith.addf %20, %23 : vector<16x64xf32>
    %c0_17 = arith.constant 0 : index
    %c0_18 = arith.constant 0 : index
    %c0_19 = arith.constant 0 : index
    %25 = vector.load %arg7[%c0_17, %c0_18, %c0_19] : memref<1x32x64xf32, #tpu.memory_space<vmem>>, vector<1x32x64xf32>
    %26 = vector.shape_cast %25 : vector<1x32x64xf32> to vector<32x64xf32>
    %cst_20 = arith.constant dense<0.000000e+00> : vector<16x64xf32>
    %27 = tpu.matmul %17, %26, %cst_20 {dimension_numbers = #tpu.dot_dimension_numbers<[1], [0], [0], [1], [0, 0, 1, 1], [], []>} : vector<16x32xf32>, vector<32x64xf32>, vector<16x64xf32> -> vector<16x64xf32>
    %28 = arith.addf %24, %27 : vector<16x64xf32>
    %c0_21 = arith.constant 0 : index
    %c0_22 = arith.constant 0 : index
    %c0_23 = arith.constant 0 : index
    %29 = vector.load %arg8[%c0_21, %c0_22, %c0_23] : memref<1x1x64xf32, #tpu.memory_space<vmem>>, vector<1x1x64xf32>
    %30 = vector.shape_cast %29 : vector<1x1x64xf32> to vector<1x64xf32>
    %31 = vector.broadcast %30 : vector<1x64xf32> to vector<16x64xf32>
    %32 = arith.addf %28, %31 : vector<16x64xf32>
    %cst_24 = arith.constant 0.000000e+00 : f32
    %33 = vector.broadcast %cst_24 : f32 to vector<16x64xf32>
    %34 = arith.maximumf %32, %33 : vector<16x64xf32>
    %c0_25 = arith.constant 0 : index
    %c0_26 = arith.constant 0 : index
    %c0_27 = arith.constant 0 : index
    %35 = vector.load %arg9[%c0_25, %c0_26, %c0_27] : memref<1x64x64xf32, #tpu.memory_space<vmem>>, vector<1x64x64xf32>
    %36 = vector.shape_cast %35 : vector<1x64x64xf32> to vector<64x64xf32>
    %cst_28 = arith.constant dense<0.000000e+00> : vector<16x64xf32>
    %37 = tpu.matmul %34, %36, %cst_28 {dimension_numbers = #tpu.dot_dimension_numbers<[1], [0], [0], [1], [0, 0, 1, 1], [], []>} : vector<16x64xf32>, vector<64x64xf32>, vector<16x64xf32> -> vector<16x64xf32>
    %c0_29 = arith.constant 0 : index
    %c0_30 = arith.constant 0 : index
    %c0_31 = arith.constant 0 : index
    %38 = vector.load %arg12[%c0_29, %c0_30, %c0_31] : memref<1x1x64xf32, #tpu.memory_space<vmem>>, vector<1x1x64xf32>
    %39 = vector.shape_cast %38 : vector<1x1x64xf32> to vector<1x64xf32>
    %40 = vector.broadcast %39 : vector<1x64xf32> to vector<16x64xf32>
    %41 = arith.addf %37, %40 : vector<16x64xf32>
    %cst_32 = arith.constant 0.000000e+00 : f32
    %42 = vector.broadcast %cst_32 : f32 to vector<16x64xf32>
    %43 = arith.maximumf %41, %42 : vector<16x64xf32>
    %c0_33 = arith.constant 0 : index
    %c0_34 = arith.constant 0 : index
    %c0_35 = arith.constant 0 : index
    %44 = vector.load %arg10[%c0_33, %c0_34, %c0_35] : memref<1x64x32xf32, #tpu.memory_space<vmem>>, vector<1x64x32xf32>
    %45 = vector.shape_cast %44 : vector<1x64x32xf32> to vector<64x32xf32>
    %cst_36 = arith.constant dense<0.000000e+00> : vector<16x32xf32>
    %46 = tpu.matmul %34, %45, %cst_36 {dimension_numbers = #tpu.dot_dimension_numbers<[1], [0], [0], [1], [0, 0, 1, 1], [], []>} : vector<16x64xf32>, vector<64x32xf32>, vector<16x32xf32> -> vector<16x32xf32>
    %c0_37 = arith.constant 0 : index
    %c0_38 = arith.constant 0 : index
    %c0_39 = arith.constant 0 : index
    %47 = vector.load %arg13[%c0_37, %c0_38, %c0_39] : memref<1x1x32xf32, #tpu.memory_space<vmem>>, vector<1x1x32xf32>
    %48 = vector.shape_cast %47 : vector<1x1x32xf32> to vector<1x32xf32>
    %49 = vector.broadcast %48 : vector<1x32xf32> to vector<16x32xf32>
    %50 = arith.addf %46, %49 : vector<16x32xf32>
    %cst_40 = arith.constant 0.000000e+00 : f32
    %51 = vector.broadcast %cst_40 : f32 to vector<16x32xf32>
    %52 = arith.maximumf %50, %51 : vector<16x32xf32>
    %c0_41 = arith.constant 0 : index
    %c0_42 = arith.constant 0 : index
    %c0_43 = arith.constant 0 : index
    %53 = vector.load %arg11[%c0_41, %c0_42, %c0_43] : memref<1x64x64xf32, #tpu.memory_space<vmem>>, vector<1x64x64xf32>
    %54 = vector.shape_cast %53 : vector<1x64x64xf32> to vector<64x64xf32>
    %cst_44 = arith.constant dense<0.000000e+00> : vector<16x64xf32>
    %55 = tpu.matmul %34, %54, %cst_44 {dimension_numbers = #tpu.dot_dimension_numbers<[1], [0], [0], [1], [0, 0, 1, 1], [], []>} : vector<16x64xf32>, vector<64x64xf32>, vector<16x64xf32> -> vector<16x64xf32>
    %c0_45 = arith.constant 0 : index
    %c0_46 = arith.constant 0 : index
    %c0_47 = arith.constant 0 : index
    %56 = vector.load %arg14[%c0_45, %c0_46, %c0_47] : memref<1x1x64xf32, #tpu.memory_space<vmem>>, vector<1x1x64xf32>
    %57 = vector.shape_cast %56 : vector<1x1x64xf32> to vector<1x64xf32>
    %58 = vector.broadcast %57 : vector<1x64xf32> to vector<16x64xf32>
    %59 = arith.addf %55, %58 : vector<16x64xf32>
    %cst_48 = arith.constant 0.000000e+00 : f32
    %60 = vector.broadcast %cst_48 : f32 to vector<16x64xf32>
    %61 = arith.maximumf %59, %60 : vector<16x64xf32>
    %62 = arith.addf %10, %15 : vector<16x8xf32>
    %cst_49 = arith.constant dense<0.000000e+00> : vector<8xf32>
    %63 = vector.multi_reduction <add>, %62, %cst_49 [0] : vector<16x8xf32> to vector<8xf32>
    %64 = vector.shape_cast %63 : vector<8xf32> to vector<1x8xf32>
    %cst_50 = arith.constant 1.000000e+00 : f32
    %65 = vector.broadcast %cst_50 : f32 to vector<1x8xf32>
    %66 = arith.maximumf %64, %65 : vector<1x8xf32>
    %67 = tpu.reciprocal %66 : vector<1x8xf32> -> vector<1x8xf32>
    %68 = vector.broadcast %67 : vector<1x8xf32> to vector<16x8xf32>
    %69 = arith.mulf %10, %68 : vector<16x8xf32>
    %cst_51 = arith.constant dense<0.000000e+00> : vector<8x64xf32>
    %70 = tpu.matmul %69, %43, %cst_51 {dimension_numbers = #tpu.dot_dimension_numbers<[0], [0], [1], [1], [0, 1, 1, 1], [], []>} : vector<16x8xf32>, vector<16x64xf32>, vector<8x64xf32> -> vector<8x64xf32>
    %71 = vector.broadcast %67 : vector<1x8xf32> to vector<16x8xf32>
    %72 = arith.mulf %15, %71 : vector<16x8xf32>
    %cst_52 = arith.constant dense<0.000000e+00> : vector<8x64xf32>
    %73 = tpu.matmul %72, %61, %cst_52 {dimension_numbers = #tpu.dot_dimension_numbers<[0], [0], [1], [1], [0, 1, 1, 1], [], []>} : vector<16x8xf32>, vector<16x64xf32>, vector<8x64xf32> -> vector<8x64xf32>
    %74 = arith.addf %70, %73 : vector<8x64xf32>
    %c0_53 = arith.constant 0 : index
    %c0_54 = arith.constant 0 : index
    %c0_55 = arith.constant 0 : index
    %75 = vector.load %arg15[%c0_53, %c0_54, %c0_55] : memref<1x64x64xf32, #tpu.memory_space<vmem>>, vector<1x64x64xf32>
    %76 = vector.shape_cast %75 : vector<1x64x64xf32> to vector<64x64xf32>
    %cst_56 = arith.constant dense<0.000000e+00> : vector<8x64xf32>
    %77 = tpu.matmul %74, %76, %cst_56 {dimension_numbers = #tpu.dot_dimension_numbers<[1], [0], [0], [1], [0, 0, 1, 1], [], []>} : vector<8x64xf32>, vector<64x64xf32>, vector<8x64xf32> -> vector<8x64xf32>
    %c0_57 = arith.constant 0 : index
    %c0_58 = arith.constant 0 : index
    %c0_59 = arith.constant 0 : index
    %78 = vector.load %arg16[%c0_57, %c0_58, %c0_59] : memref<1x1x64xf32, #tpu.memory_space<vmem>>, vector<1x1x64xf32>
    %79 = vector.shape_cast %78 : vector<1x1x64xf32> to vector<1x64xf32>
    %80 = vector.broadcast %79 : vector<1x64xf32> to vector<8x64xf32>
    %81 = arith.addf %77, %80 : vector<8x64xf32>
    %cst_60 = arith.constant 0.000000e+00 : f32
    %82 = vector.broadcast %cst_60 : f32 to vector<8x64xf32>
    %83 = arith.maximumf %81, %82 : vector<8x64xf32>
    %c0_61 = arith.constant 0 : index
    %c0_62 = arith.constant 0 : index
    %c0_63 = arith.constant 0 : index
    %84 = vector.load %arg17[%c0_61, %c0_62, %c0_63] : memref<1x64x32xf32, #tpu.memory_space<vmem>>, vector<1x64x32xf32>
    %85 = vector.shape_cast %84 : vector<1x64x32xf32> to vector<64x32xf32>
    %cst_64 = arith.constant dense<0.000000e+00> : vector<8x32xf32>
    %86 = tpu.matmul %83, %85, %cst_64 {dimension_numbers = #tpu.dot_dimension_numbers<[1], [0], [0], [1], [0, 0, 1, 1], [], []>} : vector<8x64xf32>, vector<64x32xf32>, vector<8x32xf32> -> vector<8x32xf32>
    %c0_65 = arith.constant 0 : index
    %c0_66 = arith.constant 0 : index
    %c0_67 = arith.constant 0 : index
    %87 = vector.load %arg18[%c0_65, %c0_66, %c0_67] : memref<1x1x32xf32, #tpu.memory_space<vmem>>, vector<1x1x32xf32>
    %88 = vector.shape_cast %87 : vector<1x1x32xf32> to vector<1x32xf32>
    %89 = vector.broadcast %88 : vector<1x32xf32> to vector<8x32xf32>
    %90 = arith.addf %86, %89 : vector<8x32xf32>
    %cst_68 = arith.constant 0.000000e+00 : f32
    %91 = vector.broadcast %cst_68 : f32 to vector<8x32xf32>
    %92 = arith.maximumf %90, %91 : vector<8x32xf32>
    %c0_69 = arith.constant 0 : index
    %c0_70 = arith.constant 0 : index
    %93 = vector.load %arg19[%c0_69, %c0_70] : memref<8x32xf32, #tpu.memory_space<vmem>>, vector<8x32xf32>
    tpu.vector_store %arg19[%c0_69, %c0_70], %92 {strides = array<i32>} : memref<8x32xf32, #tpu.memory_space<vmem>>, vector<8x32xf32>,
    %c0_71 = arith.constant 0 : index
    %c0_72 = arith.constant 0 : index
    %94 = vector.load %arg20[%c0_71, %c0_72] : memref<16x32xf32, #tpu.memory_space<vmem>>, vector<16x32xf32>
    tpu.vector_store %arg20[%c0_71, %c0_72], %52 {strides = array<i32>} : memref<16x32xf32, #tpu.memory_space<vmem>>, vector<16x32xf32>,
    return
  }
  func.func @transform_0(%arg0: i32) -> (i32, i32) {
    %c0_i32 = arith.constant 0 : i32
    %c0_i32_0 = arith.constant 0 : i32
    %c0_i32_1 = arith.constant 0 : i32
    return %c0_i32, %c0_i32_0 : i32, i32
  }
  func.func @transform_1(%arg0: i32) -> (i32, i32) {
    %c0_i32 = arith.constant 0 : i32
    %c0_i32_0 = arith.constant 0 : i32
    %c0_i32_1 = arith.constant 0 : i32
    return %c0_i32, %c0_i32_0 : i32, i32
  }
  func.func @transform_2(%arg0: i32) -> (i32, i32) {
    %c0_i32 = arith.constant 0 : i32
    %c0_i32_0 = arith.constant 0 : i32
    %c0_i32_1 = arith.constant 0 : i32
    return %c0_i32, %c0_i32_0 : i32, i32
  }
  func.func @transform_3(%arg0: i32) -> (i32, i32) {
    %c0_i32 = arith.constant 0 : i32
    %c0_i32_0 = arith.constant 0 : i32
    %c0_i32_1 = arith.constant 0 : i32
    return %c0_i32, %c0_i32_0 : i32, i32
  }
  func.func @transform_4(%arg0: i32) -> (i32, i32, i32) {
    %c0_i32 = arith.constant 0 : i32
    %c0_i32_0 = arith.constant 0 : i32
    %c0_i32_1 = arith.constant 0 : i32
    return %arg0, %c0_i32, %c0_i32_0 : i32, i32, i32
  }
  func.func @transform_5(%arg0: i32) -> (i32, i32, i32) {
    %c0_i32 = arith.constant 0 : i32
    %c0_i32_0 = arith.constant 0 : i32
    %c0_i32_1 = arith.constant 0 : i32
    return %arg0, %c0_i32, %c0_i32_0 : i32, i32, i32
  }
  func.func @transform_6(%arg0: i32) -> (i32, i32, i32) {
    %c0_i32 = arith.constant 0 : i32
    %c0_i32_0 = arith.constant 0 : i32
    %c0_i32_1 = arith.constant 0 : i32
    return %arg0, %c0_i32, %c0_i32_0 : i32, i32, i32
  }
  func.func @transform_7(%arg0: i32) -> (i32, i32, i32) {
    %c0_i32 = arith.constant 0 : i32
    %c0_i32_0 = arith.constant 0 : i32
    %c0_i32_1 = arith.constant 0 : i32
    return %arg0, %c0_i32, %c0_i32_0 : i32, i32, i32
  }
  func.func @transform_8(%arg0: i32) -> (i32, i32, i32) {
    %c0_i32 = arith.constant 0 : i32
    %c0_i32_0 = arith.constant 0 : i32
    %c0_i32_1 = arith.constant 0 : i32
    return %arg0, %c0_i32, %c0_i32_0 : i32, i32, i32
  }
  func.func @transform_9(%arg0: i32) -> (i32, i32, i32) {
    %c0_i32 = arith.constant 0 : i32
    %c0_i32_0 = arith.constant 0 : i32
    %c0_i32_1 = arith.constant 0 : i32
    return %arg0, %c0_i32, %c0_i32_0 : i32, i32, i32
  }
  func.func @transform_10(%arg0: i32) -> (i32, i32, i32) {
    %c0_i32 = arith.constant 0 : i32
    %c0_i32_0 = arith.constant 0 : i32
    %c0_i32_1 = arith.constant 0 : i32
    return %arg0, %c0_i32, %c0_i32_0 : i32, i32, i32
  }
  func.func @transform_11(%arg0: i32) -> (i32, i32, i32) {
    %c0_i32 = arith.constant 0 : i32
    %c0_i32_0 = arith.constant 0 : i32
    %c0_i32_1 = arith.constant 0 : i32
    return %arg0, %c0_i32, %c0_i32_0 : i32, i32, i32
  }
  func.func @transform_12(%arg0: i32) -> (i32, i32, i32) {
    %c0_i32 = arith.constant 0 : i32
    %c0_i32_0 = arith.constant 0 : i32
    %c0_i32_1 = arith.constant 0 : i32
    return %arg0, %c0_i32, %c0_i32_0 : i32, i32, i32
  }
  func.func @transform_13(%arg0: i32) -> (i32, i32, i32) {
    %c0_i32 = arith.constant 0 : i32
    %c0_i32_0 = arith.constant 0 : i32
    %c0_i32_1 = arith.constant 0 : i32
    return %arg0, %c0_i32, %c0_i32_0 : i32, i32, i32
  }
  func.func @transform_14(%arg0: i32) -> (i32, i32, i32) {
    %c0_i32 = arith.constant 0 : i32
    %c0_i32_0 = arith.constant 0 : i32
    %c0_i32_1 = arith.constant 0 : i32
    return %arg0, %c0_i32, %c0_i32_0 : i32, i32, i32
  }
  func.func @transform_15(%arg0: i32) -> (i32, i32, i32) {
    %c0_i32 = arith.constant 0 : i32
    %c0_i32_0 = arith.constant 0 : i32
    %c0_i32_1 = arith.constant 0 : i32
    return %arg0, %c0_i32, %c0_i32_0 : i32, i32, i32
  }
  func.func @transform_16(%arg0: i32) -> (i32, i32, i32) {
    %c0_i32 = arith.constant 0 : i32
    %c0_i32_0 = arith.constant 0 : i32
    %c0_i32_1 = arith.constant 0 : i32
    return %arg0, %c0_i32, %c0_i32_0 : i32, i32, i32
  }
  func.func @transform_17(%arg0: i32) -> (i32, i32, i32) {
    %c0_i32 = arith.constant 0 : i32
    %c0_i32_0 = arith.constant 0 : i32
    %c0_i32_1 = arith.constant 0 : i32
    return %arg0, %c0_i32, %c0_i32_0 : i32, i32, i32
  }
  func.func @transform_18(%arg0: i32) -> (i32, i32) {
    %c0_i32 = arith.constant 0 : i32
    %c0_i32_0 = arith.constant 0 : i32
    %c0_i32_1 = arith.constant 0 : i32
    return %c0_i32, %c0_i32_0 : i32, i32
  }
  func.func @transform_19(%arg0: i32) -> (i32, i32) {
    %c0_i32 = arith.constant 0 : i32
    %c0_i32_0 = arith.constant 0 : i32
    %c0_i32_1 = arith.constant 0 : i32
    return %c0_i32, %c0_i32_0 : i32, i32
  }
}

</mosaic_0001>

<bundles_post_ra>
// kernel: graph_triple_conv_net.1
= control target key start
LH: loop header
LB: loop body
LE: loop exit
PB: predicated region body
PF: predicated region fallthrough
CT: control target
= control target key end

     0   :  { %s3076_s0 = inlined_call_operand.vmem [shape: f32[8,32], index: 0, kind: input, shape index: {}]   ;;  %s3077_s1 = inlined_call_operand.vmem [shape: f32[16,32], index: 1, kind: input, shape index: {}]   ;;  %s3078_s2 = inlined_call_operand.vmem [shape: s32[16,1], index: 2, kind: input, shape index: {}]   ;;  %s3079_s3 = inlined_call_operand.vmem [shape: s32[16,1], index: 3, kind: input, shape index: {}]   ;;  %s3080_s4 = inlined_call_operand.vmem [shape: f32[2,32,64], index: 4, kind: input, shape index: {}]   ;;  %s3081_s5 = inlined_call_operand.vmem [shape: f32[2,32,64], index: 5, kind: input, shape index: {}]   ;;  %s3082_s6 = inlined_call_operand.vmem [shape: f32[2,32,64], index: 6, kind: input, shape index: {}]   ;;  %s3083_s7 = inlined_call_operand.vmem [shape: f32[2,1,64], index: 7, kind: input, shape index: {}]   ;;  %s3084_s8 = inlined_call_operand.vmem [shape: f32[2,64,64], index: 8, kind: input, shape index: {}]   ;;  %s3085_s9 = inlined_call_operand.vmem [shape: f32[2,64,32], index: 9, kind: input, shape index: {}]   ;;  %s3086_s10 = inlined_call_operand.vmem [shape: f32[2,64,64], index: 10, kind: input, shape index: {}]   ;;  %s3087_s11 = inlined_call_operand.vmem [shape: f32[2,1,64], index: 11, kind: input, shape index: {}]   ;;  %s3088_s12 = inlined_call_operand.vmem [shape: f32[2,1,32], index: 12, kind: input, shape index: {}]   ;;  %s3089_s13 = inlined_call_operand.vmem [shape: f32[2,1,64], index: 13, kind: input, shape index: {}]   ;;  %s3090_s14 = inlined_call_operand.vmem [shape: f32[2,64,64], index: 14, kind: input, shape index: {}]   ;;  %s3091_s15 = inlined_call_operand.vmem [shape: f32[2,1,64], index: 15, kind: input, shape index: {}]   ;;  %s3092_s16 = inlined_call_operand.vmem [shape: f32[2,64,32], index: 16, kind: input, shape index: {}]   ;;  %s3093_s17 = inlined_call_operand.vmem [shape: f32[2,1,32], index: 17, kind: input, shape index: {}]   ;;  %s3094_s18 = inlined_call_operand.hbm [shape: f32[8,32], index: 18, kind: output, shape index: {0}]   ;;  %s3095_s19 = inlined_call_operand.hbm [shape: f32[16,32], index: 19, kind: output, shape index: {1}]  }
   0x1   :  { %3104 = sst [smem:[#allocation10_spill]] %s3076_s0 }
   0x2   :  { %3105 = sst [smem:[#allocation11_spill]] %s3077_s1 }
   0x3   :  { %3106 = sst [smem:[#allocation12_spill]] %s3078_s2 }
   0x4   :  { %3107 = sst [smem:[#allocation13_spill]] %s3079_s3 }
   0x5   :  { %3108 = sst [smem:[#allocation14_spill]] %s3080_s4 }
   0x6   :  { %3109 = sst [smem:[#allocation15_spill]] %s3081_s5 }
   0x7   :  { %3110 = sst [smem:[#allocation16_spill]] %s3082_s6 }
   0x8   :  { %3111 = sst [smem:[#allocation17_spill]] %s3083_s7 }
   0x9   :  { %3112 = sst [smem:[#allocation18_spill]] %s3084_s8 }
   0xa   :  { %3113 = sst [smem:[#allocation19_spill]] %s3085_s9 }
   0xb   :  { %3114 = sst [smem:[#allocation20_spill]] %s3086_s10 }
   0xc   :  { %3115 = sst [smem:[#allocation21_spill]] %s3094_s18 }
   0xd   :  { %3116 = sst [smem:[#allocation22_spill]] %s3095_s19 }
   0xe   :  { %25 = vsyncpa [#allocation3], 0 }
   0xf   :  { %26 = vsyncpa [#allocation5], 0  ;;  %s2799_s0 = smov 0  }
  0x10 LB: > { %3117 = sst [smem:[#allocation8_spill]] %s2689_s0  ;;  %s2805_s30 = sadd.s32 4294967295, %s2689_s0   ;;  %s2689_s0 = sphi %s2799_s0, %s32_s0  }
  0x11   : > { %3118 = sst [smem:[#allocation9_spill]] %s2805_s30  ;;  %p2191_p0 = scmp.ge.s32.totalorder %s2689_s0, 1 }
  0x12   : > { %p650_p1 = scmp.lt.s32.totalorder %s2689_s0, 3 }
  0x14   : > { %p651_p2 = pnand %p2191_p0, %p650_p1 }
  0x15   : > { %p754_p3 = scmp.lt.s32.totalorder (!%p651_p2), %s2805_s30, 1  ;;  %s3120_s4 = sld [smem:[#allocation14_spill]] (!%p651_p2) }
  0x16   : > { %654 = sbr.rel (%p651_p2) target bundleno = 1532 (0x5fc), region = 92  ;;  %s3121_s5 = sld [smem:[#allocation15_spill]] (!%p651_p2) }
  0x17   : > { %s3122_s6 = sld [smem:[#allocation16_spill]] (!%p651_p2)  ;;  %s3123_s8 = sld [smem:[#allocation18_spill]] (!%p651_p2) }
  0x18   : > { %s3124_s9 = sld [smem:[#allocation19_spill]] (!%p651_p2)  ;;  %s3125_s10 = sld [smem:[#allocation20_spill]] (!%p651_p2) }
  0x1d   : > { %s2811_s20 = scalar_select %p754_p3, %s2805_s30, 1 }
  0x1f   : > { %s2245_s21 = sshll.u32 %s2811_s20, 5  ;;  %s2248_s18 = sshll.u32 %s2811_s20, 6 }
  0x20   : > { %s2821_s25 = scalar_lea.vmem %s3120_s4, %s2245_s21  ;;  %s2826_s27 = scalar_lea.vmem %s3121_s5, %s2245_s21 }
  0x21   : > { %s2831_s0 = scalar_lea.vmem %s3122_s6, %s2245_s21  ;;  %s2837_s1 = scalar_lea.vmem %s3123_s8, %s2248_s18 }
  0x22   : > { %s2842_s24 = scalar_lea.vmem %s3124_s9, %s2248_s18  ;;  %s2847_s26 = scalar_lea.vmem %s3125_s10, %s2248_s18 }
  0x23   : > { %s789_s21 = scalar_lea.vmem %s3087_s11, %s2811_s20  ;;  %s2864_s9 = scalar_lea.vmem %s3090_s14, %s2248_s18 }
  0x24   : > { %s2873_s28 = scalar_lea.vmem %s3092_s16, %s2248_s18  ;;  %s811_s19 = scalar_lea.vmem %s3093_s17, %s2811_s20 }
  0x25   : > { %s3126_s6 = sld [smem:[#allocation9_spill]] }
  0x2b   : > { %p2208_p4 = scmp.ne.s32.totalorder %s3126_s6, 0 }
  0x2c   : > { %s3127_s23 = sld [smem:[#allocation10_spill]] (!%p2208_p4)  ;;  %vm817_vm0 = vcmask (!%p2208_p4), 261120   ;;  %s3128_s3 = sld [smem:[#allocation11_spill]] (!%p2208_p4) }
  0x2d   : > { %815 = sbr.rel (%p2208_p4) target bundleno = 53 (0x35), region = 96 }
  0x32   : > { %v816_v0 = vld [vmem:[%s3127_s23] sm:$0xff] (!%p2208_p4)  ;;  %v820_v2 = vld [vmem:[%s3128_s3 + $0x8] sm:$0xff] (!%p2208_p4) }
  0x33   : > { %v819_v1 = vld [vmem:[%s3128_s3] sm:$0xff] (!%p2208_p4)  ;;  %818 = vst.msk [vmem:[#allocation2] sm:$0xff] (!%p2208_p4), %vm817_vm0, %v816_v0  ;;  %822 = vst.msk [vmem:[#allocation4 + $0x8] sm:$0xff] (!%p2208_p4), %vm817_vm0, %v820_v2 }
  0x34   : > { %821 = vst.msk [vmem:[#allocation4] sm:$0xff] %vm817_vm0, %v819_v1 }
  0x35 PF: > { %s3129_s5 = sld [smem:[#allocation13_spill]]  ;;  %s3130_s30 = sld [smem:[#allocation12_spill]]  ;;  %v2691_v5 = vmov 0   ;;  %v1023_v9 = vld [vmem:[%s2826_s27] sm:$0xff]  ;;  %v1024_v10 = vld [vmem:[%s2826_s27 + $0x8] sm:$0xff]  ;;  %v826_v12 = vlaneseq  ;;  %vm856_vm1 = vcmask 64512  }
  0x36   : > { %2620 = vset.pattern.permute.xlu1 %v2691_v5  ;;  %2619 = vset.pattern.permute.xlu0 %v2691_v5  ;;  %v2483_v11 = vpack.c.bf16 %v1024_v10, %v1023_v9  ;;  %v2692_v16 = vmov 0.0   ;;  %v1025_v19 = vld [vmem:[%s2826_s27 + $0x10] sm:$0xff]  ;;  %v1026_v20 = vld [vmem:[%s2826_s27 + $0x18] sm:$0xff]  ;;  %vm1027_vm4 = vcmask 261120   ;;  %v1019_v28 = vld [vmem:[%s2821_s25] sm:$0xff]  ;;  %s3131_s27 = sld [smem:[#allocation17_spill]]  ;;  %s3133_s18 = scalar_lea.vmem %s3089_s13, %s2811_s20 }
  0x37   : > { %v827_v13 = vand.u32 127, %v826_v12  ;;  %v2487_v24 = vpack.c.bf16 %v1026_v20, %v1025_v19  ;;  %v1020_v29 = vld [vmem:[%s2821_s25 + $0x8] sm:$0xff]  ;;  %v1021_v35 = vld [vmem:[%s2821_s25 + $0x10] sm:$0xff]  ;;  %v1022_v36 = vld [vmem:[%s2821_s25 + $0x18] sm:$0xff]  ;;  %vm1303_vm7 = vcmask 523264   ;;  %vm2694_vm8 = vmmov 0   ;;  %s3134_s4 = scalar_lea.vmem %s3088_s12, %s2811_s20  ;;  %s3136_s10 = scalar_lea.vmem %s3091_s15, %s2811_s20 }
  0x38   : > { %v2491_v33 = vpack.c.bf16 %v1020_v29, %v1019_v28  ;;  %v2495_v39 = vpack.c.bf16 %v1022_v36, %v1021_v35  ;;  %v1190_v51 = vld [vmem:[%s2831_s0] sm:$0xff]  ;;  %v1191_v52 = vld [vmem:[%s2831_s0 + $0x8] sm:$0xff]  ;;  %v1290_v57 = vld [vmem:[%s2837_s1 + $0x10] sm:$0xff]  ;;  %vm1620_vm9 = vcmask 130048   ;;  %s3135_s29 = sld [smem:[#allocation9_spill]]  ;;  %s2695_s22 = smov [#allocation4]  }
  0x39   : > { %v2499_v53 = vpack.c.bf16 %v1191_v52, %v1190_v51  ;;  %v1288_v54 = vld [vmem:[%s2837_s1] sm:$0xff]  ;;  %v1289_v55 = vld [vmem:[%s2837_s1 + $0x8] sm:$0xff]  ;;  %v1291_v58 = vld [vmem:[%s2837_s1 + $0x18] sm:$0xff]  ;;  %s1997_s23 = sshll.u32 %s2695_s22, 4  ;;  %s1998_s23 = int_to_ptr.vmem [resolvable:$true] %s1997_s23 }
  0x3a   : > { %v2507_v56 = vpack.c.bf16 %v1289_v55, %v1288_v54  ;;  %v2511_v59 = vpack.c.bf16 %v1291_v58, %v1290_v57  ;;  %v1292_v60 = vld [vmem:[%s2837_s1 + $0x20] sm:$0xff]  ;;  %v1293_v61 = vld [vmem:[%s2837_s1 + $0x28] sm:$0xff]  ;;  %v1192_v63 = vld [vmem:[%s2831_s0 + $0x10] sm:$0xff]  ;;  %p2630_p9 = scmp.lt.s32.totalorder %s1998_s23, %s1998_s23 }
  0x3b   : > { %v842_v3 = vld [vmem:[%s3129_s5] sm:$0xff]  ;;  %v843_v6 = vld [vmem:[%s3129_s5 + $0x8] sm:$0xff]  ;;  %v825_v38 = vld [vmem:[#allocation4 + $0x8] sm:$0xff]  ;;  %v2515_v62 = vpack.c.bf16 %v1293_v61, %v1292_v60 }
  0x3c   : > { %v828_v4 = vld [vmem:[%s3130_s30] sm:$0xff]  ;;  %845 = vperm.xlu1 %2620, %v842_v3   ;;  %v829_v7 = vld [vmem:[%s3130_s30 + $0x8] sm:$0xff]  ;;  %v1193_v0 = vld [vmem:[%s2831_s0 + $0x18] sm:$0xff]  ;;  %s2623_s0 = scalar_lea.vmem %s1998_s23, 256 }
  0x3d   : > { %831 = vperm.xlu0 %2619, %v828_v4   ;;  %v823_v8 = vld [vmem:[#allocation2] sm:$0xff]  ;;  %v824_v25 = vld [vmem:[#allocation4] sm:$0xff]  ;;  %v2503_v5 = vpack.c.bf16 %v1193_v0, %v1192_v63  ;;  %v1481_v9 = vld [vmem:[%s2847_s26 + $0x10] sm:$0xff]  ;;  %p2624_p6 = scmp.ne.s32.totalorder %s1998_s23, %s2623_s0  ;;  %p2631_p10 = scmp.lt.s32.totalorder %s2623_s0, %s2623_s0 }
  0x3e   : > { %2331 = vmatprep.subr.mxu0 %v823_v8  ;;  %2336 = vmatprep.subr.mxu1 %v823_v8  ;;  %v1482_v10 = vld [vmem:[%s2847_s26 + $0x18] sm:$0xff]  ;;  %v1483_v12 = vld [vmem:[%s2847_s26 + $0x20] sm:$0xff]  ;;  %v1485_v19 = vld [vmem:[%s2847_s26 + $0x30] sm:$0xff]  ;;  %p2599_p5 = scmp.eq.s32.totalorder %s3135_s29, 1 }
  0x3f   : > { %2332 = vmatpush3.msra.mxu0 %v823_v8  ;;  %2337 = vmatpush3.msra.mxu1 %v823_v8  ;;  %v1486_v20 = vld [vmem:[%s2847_s26 + $0x38] sm:$0xff]  ;;  %v1391_v35 = vld [vmem:[%s2842_s24 + $0x20] sm:$0xff]  ;;  %v1392_v36 = vld [vmem:[%s2842_s24 + $0x28] sm:$0xff]  ;;  %p2632_p11 = por %p2631_p10, %p2630_p9 }
  0x40   : > { %848 = vperm.xlu1 %2620, %v843_v6   ;;  %2484 = vmatprep.subr.bf16.mxu0 %v2483_v11  ;;  %v1479_v6 = vld [vmem:[%s2847_s26] sm:$0xff]  ;;  %v1805_v51 = vld [vmem:[%s2864_s9 + $0x30] sm:$0xff]  ;;  %v1806_v52 = vld [vmem:[%s2864_s9 + $0x38] sm:$0xff]  ;;  %p2625_p7 = pnand %p2624_p6, %p2599_p5 }
  0x41   : > { %834 = vperm.xlu0 %2619, %v829_v7   ;;  %2508 = vmatprep.subr.bf16.mxu1 %v2507_v56  ;;  %v1480_v7 = vld [vmem:[%s2847_s26 + $0x8] sm:$0xff]  ;;  %v2224_v54 = vld [vmem:[%s789_s21] ss:$0 sm:$0xff] }
  0x42   : > { %v2539_v8 = vpack.c.bf16 %v1480_v7, %v1479_v6  ;;  %v2230_v55 = vld [vmem:[%s3133_s18] ss:$0 sm:$0xff]  ;;  %p2626_p8 = pneg %p2625_p7 }
  0x43   : > { %v2227_v7 = vld [vmem:[%s3134_s4] ss:$0 sm:$0xff] }
  0x44   : > { %p2633_p12 = pnand %p2632_p11, %p2626_p8 }
  0xbb   : > { %v846_v14 = vpop.permute.xlu1 %845 }
  0xbc   : > { %v832_v15 = vpop.permute.xlu0 %831  ;;  %vm850_vm2 = vcmp.eq.s32.totalorder %v827_v13, %v846_v14 }
  0xbd   : > { %vm836_vm3 = vcmp.eq.s32.totalorder %v827_v13, %v832_v15  ;;  %v2211_v17 = vsel %vm850_vm2, 1.0, %v2692_v16  ;;  %v1294_v15 = vld [vmem:[%s2837_s1 + $0x30] sm:$0xff] }
  0xbe   : > { %v2209_v18 = vsel %vm836_vm3, 1.0, %v2692_v16  ;;  %2338 = vmatprep.mubr.msk.f32.mxu1 %vm856_vm1, %v2211_v17 }
  0xbf   : > { %2333 = vmatprep.mubr.msk.f32.mxu0 %vm856_vm1, %v2209_v18  ;;  %v849_v21 = vpop.permute.xlu1 %848  ;;  %v1571_v23 = vadd.f32 %v2211_v17, %v2209_v18 }
  0xc0   : > { %v835_v22 = vpop.permute.xlu0 %834  ;;  %vm851_vm5 = vcmp.eq.s32.totalorder %v827_v13, %v849_v21  ;;  %v2551_v21 = vpack.c.bf16 %v1486_v20, %v1485_v19  ;;  %v1891_v20 = vld [vmem:[%s2873_s28 + $0x18] sm:$0xff] }
  0xc1   : > { %vm837_vm6 = vcmp.eq.s32.totalorder %v827_v13, %v835_v22  ;;  %v2212_v26 = vsel %vm851_vm5, 1.0, %v2692_v16  ;;  %v1573_v31 = vsel %vm856_vm1, %v1571_v23, 0.0  ;;  %v1484_v13 = vld [vmem:[%s2847_s26 + $0x28] sm:$0xff]  ;;  %v1387_v22 = vld [vmem:[%s2842_s24] sm:$0xff] }
  0xc2   : > { %v2210_v27 = vsel %vm837_vm6, 1.0, %v2692_v16  ;;  %2339 = vmatmul.mubr.msk.f32.vlgmr.msra.gmra.mrb[0].mxu1 %vm856_vm1, %v2212_v26  ;;  %v2547_v14 = vpack.c.bf16 %v1484_v13, %v1483_v12  ;;  %v1388_v23 = vld [vmem:[%s2842_s24 + $0x8] sm:$0xff] }
  0xc3   : > { %v1572_v30 = vadd.f32 %v2212_v26, %v2210_v27  ;;  %2334 = vmatmul.mubr.msk.f32.vlgmr.msra.gmra.mrb[0].mxu0 %vm856_vm1, %v2210_v27  ;;  %2510 = vmatpush3.bf16.msra.mxu1 %v2507_v56 }
  0xc4   : > { %2486 = vmatpush3.bf16.msra.mxu0 %v2483_v11  ;;  %2349 = vmatprep.mubr.msk.f32.mxu0 %vm1027_vm4, %v824_v25  ;;  %v2543_v11 = vpack.c.bf16 %v1482_v10, %v1481_v9 }
  0xc5   : > { %v1574_v32 = vsel %vm856_vm1, %v1572_v30, 0.0  ;;  %2488 = vmatprep.subr.bf16.mxu0 %v2487_v24  ;;  %2512 = vmatprep.subr.bf16.mxu1 %v2511_v59  ;;  %v1389_v30 = vld [vmem:[%s2842_s24 + $0x10] sm:$0xff] }
  0xc6   : > { %v1575_v34 = vadd.f32 %v1574_v32, %v1573_v31  ;;  %v1390_v31 = vld [vmem:[%s2842_s24 + $0x18] sm:$0xff] }
  0xc7   : > { %2514 = vmatpush3.bf16.msra.mxu1 %v2511_v59 }
  0xc8   : > { %v1576_v37 = vrot.slane %v1575_v34, 4  ;;  %2490 = vmatpush3.bf16.msra.mxu0 %v2487_v24  ;;  %2516 = vmatprep.subr.bf16.mxu1 %v2515_v62  ;;  %v2523_v24 = vpack.c.bf16 %v1388_v23, %v1387_v22  ;;  %v1892_v22 = vld [vmem:[%s2873_s28 + $0x20] sm:$0xff]  ;;  %v1893_v23 = vld [vmem:[%s2873_s28 + $0x28] sm:$0xff] }
  0xc9   : > { %2492 = vmatprep.subr.bf16.mxu0 %v2491_v33 }
  0xca   : > { %v1577_v40 = vadd.f32 %v1576_v37, %v1575_v34  ;;  %v2527_v34 = vpack.c.bf16 %v1390_v31, %v1389_v30  ;;  %v2531_v37 = vpack.c.bf16 %v1392_v36, %v1391_v35 }
  0xcb   : > { %2350 = vmatmul.mubr.msk.f32.vlgmr.msra.gmra.mrb[2].mxu0 %vm1027_vm4, %v825_v38  ;;  %2518 = vmatpush3.bf16.msra.mxu1 %v2515_v62  ;;  %v1393_v38 = vld [vmem:[%s2842_s24 + $0x30] sm:$0xff] }
  0xcc   : > { %v1578_v41 = vrot.slane %v1577_v40, 2  ;;  %2494 = vmatpush3.bf16.msra.mxu0 %v2491_v33 }
  0xcd   : > { %2496 = vmatprep.subr.bf16.mxu0 %v2495_v39 }
  0xce   : > { %v1579_v42 = vadd.f32 %v1578_v41, %v1577_v40  ;;  %v2693_v41 = vmov 0.0|0.0  }
  0xd0   : > { %v1580_v43 = vrot.slane %v1579_v42, 1  ;;  %2498 = vmatpush3.bf16.msra.mxu0 %v2495_v39  ;;  %v1394_v39 = vld [vmem:[%s2842_s24 + $0x38] sm:$0xff] }
  0xd1   : > { %2500 = vmatprep.subr.bf16.mxu0 %v2499_v53  ;;  %v2535_v40 = vpack.c.bf16 %v1394_v39, %v1393_v38 }
  0xd2   : > { %v1581_v44 = vadd.f32 %v1580_v43, %v1579_v42  ;;  %v1799_v42 = vld [vmem:[%s2864_s9] sm:$0xff]  ;;  %v1800_v43 = vld [vmem:[%s2864_s9 + $0x8] sm:$0xff] }
  0xd4   : > { %v1582_v45 = vmax.f32 %v1581_v44, 1.0  ;;  %v1801_v44 = vld [vmem:[%s2864_s9 + $0x10] sm:$0xff] }
  0xd6   : > { %2621 = vrcp.f32 %v1582_v45  ;;  %v2562_v45 = vpack.c.bf16 %v1800_v43, %v1799_v42 }
  0xe0   : > { %v2622_v46 = vpop.eup %2621 }
  0xe1   : > { %v1586_v47 = vmul.f32 %v2622_v46, %v2211_v17  ;;  %v1584_v48 = vmul.f32 %v2622_v46, %v2209_v18  ;;  %v1585_v49 = vmul.f32 %v2622_v46, %v2210_v27  ;;  %v1587_v50 = vmul.f32 %v2622_v46, %v2212_v26  ;;  %v1295_v17 = vld [vmem:[%s2837_s1 + $0x38] sm:$0xff]  ;;  %s3132_s1 = scalar_lea.vmem %s3131_s27, %s2811_s20 }
  0xe2   : > { %v2519_v18 = vpack.c.bf16 %v1295_v17, %v1294_v15  ;;  %v2223_v25 = vld [vmem:[%s3132_s1] ss:$0 sm:$0xff]  ;;  %v1802_v46 = vld [vmem:[%s2864_s9 + $0x18] sm:$0xff]  ;;  %v1889_v17 = vld [vmem:[%s2873_s28 + $0x8] sm:$0xff] }
  0xe3   : > { %1588 = vxpose.xlu0.b32.start [1/2] (short) (narrow) %v1586_v47, 8  ;;  %1694 = vxpose.xlu1.b32.start [1/2] (short) (narrow) %v1584_v48, 8  ;;  %v2565_v47 = vpack.c.bf16 %v1802_v46, %v1801_v44  ;;  %v1803_v48 = vld [vmem:[%s2864_s9 + $0x20] sm:$0xff] }
  0xe4   : > { %2520 = vmatprep.subr.bf16.mxu1 %v2519_v18  ;;  %v1888_v15 = vld [vmem:[%s2873_s28] sm:$0xff] }
  0xe5   : > { %2522 = vmatpush3.bf16.msra.mxu1 %v2519_v18  ;;  %v1890_v18 = vld [vmem:[%s2873_s28 + $0x10] sm:$0xff]  ;;  %v2574_v19 = vpack.c.bf16 %v1889_v17, %v1888_v15 }
  0xe6   : > { %2524 = vmatprep.subr.bf16.mxu1 %v2523_v24 }
  0xe7   : > { %1589 = vxpose.xlu0.b32.end [2/2] (short) (narrow) %v1587_v50, 8  ;;  %1695 = vxpose.xlu1.b32.end [2/2] (short) (narrow) %v1585_v49, 8  ;;  %v1804_v49 = vld [vmem:[%s2864_s9 + $0x28] sm:$0xff] }
  0xe8   : > { %v2568_v50 = vpack.c.bf16 %v1804_v49, %v1803_v48 }
 0x163   : > { %v1604_v6 = vpop.trf.xlu0  ;;  %v1710_v9 = vpop.trf.xlu1 }
 0x195   : > { %v2340_v2 = vpop.f32.mrb[0].mxu1 }
 0x196   : > { %v2335_v1 = vpop.f32.mrb[0].mxu0  ;;  %v1010_v4 = vpop.f32.mrb[1].mxu1 }
 0x197   : > { %v929_v3 = vpop.f32.mrb[1].mxu0 }
 0x198   : > { %2360 = vmatprep.mubr.msk.f32.mxu0 %vm1027_vm4, %v929_v3 }
 0x199   : > { %2361 = vmatmul.mubr.msk.f32.vlgmr.msra.gmra.mrb[2].mxu0 %vm1027_vm4, %v2335_v1 }
 0x19a   : > { %2502 = vmatpush3.bf16.msra.mxu0 %v2499_v53  ;;  %2371 = vmatprep.mubr.msk.f32.mxu0 %vm1027_vm4, %v1010_v4  ;;  %v2571_v53 = vpack.c.bf16 %v1806_v52, %v1805_v51 }
 0x19b   : > { %2504 = vmatprep.subr.bf16.mxu0 %v2503_v5 }
 0x19e   : > { %2506 = vmatpush3.bf16.msra.mxu0 %v2503_v5 }
 0x19f   : > { %2540 = vmatprep.subr.bf16.mxu0 %v2539_v8 }
 0x1a1   : > { %2372 = vmatmul.mubr.msk.f32.vlgmr.msra.gmra.mrb[2].mxu0 %vm1027_vm4, %v2340_v2 }
 0x1a2   : > { %2542 = vmatpush3.bf16.msra.mxu0 %v2539_v8 }
 0x1a3   : > { %2544 = vmatprep.subr.bf16.mxu0 %v2543_v11 }
 0x1a6   : > { %2546 = vmatpush3.bf16.msra.mxu0 %v2543_v11 }
 0x1a7   : > { %2548 = vmatprep.subr.bf16.mxu0 %v2547_v14 }
 0x1aa   : > { %2550 = vmatpush3.bf16.msra.mxu0 %v2547_v14 }
 0x1ab   : > { %2552 = vmatprep.subr.bf16.mxu0 %v2551_v21 }
 0x1ae   : > { %2554 = vmatpush3.bf16.msra.mxu0 %v2551_v21  ;;  %v2577_v21 = vpack.c.bf16 %v1891_v20, %v1890_v18 }
 0x1af   : > { %2561 = vmatprep.subr.bf16.mxu0 %v2693_v41 }
 0x274   : > { %v2373_v26 = vpop.f32.mrb[2].mxu0 }
 0x275   : > { %v1285_v27 = vadd.f32 %v2373_v26, %v2223_v25  ;;  %v1266_v28 = vpop.f32.mrb[3].mxu0  ;;  %v1894_v26 = vld [vmem:[%s2873_s28 + $0x30] sm:$0xff] }
 0x276   : > { %v1284_v29 = vadd.f32 %v2223_v25, %v1266_v28 }
 0x277   : > { %v1287_v33 = vmax.f32 %v1285_v27, 0.0  ;;  %v1895_v27 = vld [vmem:[%s2873_s28 + $0x38] sm:$0xff] }
 0x278   : > { %v1286_v32 = vmax.f32 %v1284_v29, 0.0  ;;  %v2583_v28 = vpack.c.bf16 %v1895_v27, %v1894_v26  ;;  %v2235_v29 = vld [vmem:[%s3136_s10] ss:$0 sm:$0xff] }
 0x27a   : > { %2390 = vmatprep.mubr.msk.f32.mxu1 %vm1303_vm7, %v1286_v32  ;;  %2428 = vmatprep.mubr.msk.f32.mxu0 %vm1303_vm7, %v1286_v32 }
 0x27b   : > { %2391 = vmatmul.mubr.msk.f32.vlgmr.msra.gmra.mrb[2].mxu1 %vm1303_vm7, %v1287_v33  ;;  %2429 = vmatmul.mubr.msk.f32.vlgmr.msra.gmra.mrb[4].mxu0 %vm1303_vm7, %v1287_v33 }
 0x27c   : > { %2526 = vmatpush3.bf16.msra.mxu1 %v2523_v24  ;;  %2409 = vmatprep.mubr.msk.f32.mxu1 %vm1303_vm7, %v1286_v32 }
 0x27d   : > { %2528 = vmatprep.subr.bf16.mxu1 %v2527_v34  ;;  %2461 = vmatprep.mubr.msk.f32.mxu0 %vm2694_vm8, %v2692_v16 }
 0x27e   : > { %2563 = vmatpush3.bf16.msra.mxu0 %v2562_v45 }
 0x27f   : > { %2564 = vmatprep.subr.bf16.mxu0 %v2693_v41 }
 0x280   : > { %2530 = vmatpush3.bf16.msra.mxu1 %v2527_v34 }
 0x281   : > { %2532 = vmatprep.subr.bf16.mxu1 %v2531_v37 }
 0x282   : > { %2566 = vmatpush3.bf16.msra.mxu0 %v2565_v47 }
 0x283   : > { %2567 = vmatprep.subr.bf16.mxu0 %v2693_v41 }
 0x284   : > { %2534 = vmatpush3.bf16.msra.mxu1 %v2531_v37 }
 0x285   : > { %2536 = vmatprep.subr.bf16.mxu1 %v2535_v40 }
 0x286   : > { %2569 = vmatpush3.bf16.msra.mxu0 %v2568_v50 }
 0x287   : > { %2570 = vmatprep.subr.bf16.mxu0 %v2693_v41 }
 0x288   : > { %2538 = vmatpush3.bf16.msra.mxu1 %v2535_v40 }
 0x289   : > { %2555 = vmatprep.subr.bf16.mxu1 %v2693_v41 }
 0x28a   : > { %2572 = vmatpush3.bf16.msra.mxu0 %v2571_v53 }
 0x28b   : > { %2410 = vmatmul.mubr.msk.f32.vlgmr.msra.gmra.mrb[4].mxu1 %vm1303_vm7, %v1287_v33 }
 0x28c   : > { %2435 = vmatprep.mubr.msk.f32.mxu1 %vm2694_vm8, %v2692_v16 }
 0x34e   : > { %v2392_v56 = vpop.f32.mrb[2].mxu1  ;;  %v2430_v57 = vpop.f32.mrb[4].mxu0 }
 0x34f   : > { %v1382_v58 = vadd.f32 %v2392_v56, %v2224_v54  ;;  %v1566_v59 = vadd.f32 %v2430_v57, %v2230_v55  ;;  %v1376_v60 = vpop.f32.mrb[3].mxu1  ;;  %v1560_v61 = vpop.f32.mrb[5].mxu0 }
 0x350   : > { %v1377_v62 = vadd.f32 %v2224_v54, %v1376_v60  ;;  %v1561_v63 = vadd.f32 %v2230_v55, %v1560_v61 }
 0x351   : > { %v1386_v0 = vmax.f32 %v1382_v58, 0.0  ;;  %v1570_v1 = vmax.f32 %v1566_v59, 0.0 }
 0x352   : > { %v1385_v2 = vmax.f32 %v1377_v62, 0.0  ;;  %v1569_v3 = vmax.f32 %v1561_v63, 0.0 }
 0x354   : > { %v2559_v4 = vpack.c.bf16 %v1386_v0, %v1385_v2  ;;  %v2556_v5 = vpack.c.bf16 %v1570_v1, %v1569_v3 }
 0x356   : > { %2557 = vmatpush3.bf16.msra.mxu1 %v2556_v5 }
 0x357   : > { %2558 = vmatprep.subr.bf16.mxu1 %v2693_v41 }
 0x359   : > { %2436 = vmatmul.mubr.msk.f32.vlgmr.msra.gmra.mrb[6].mxu1 %vm1620_vm9, %v1604_v6 }
 0x35a   : > { %2560 = vmatpush3.bf16.msra.mxu1 %v2559_v4  ;;  %2442 = vmatprep.mubr.msk.f32.mxu1 %vm2694_vm8, %v2692_v16 }
 0x35b   : > { %2573 = vmatprep.subr.bf16.mxu1 %v2693_v41 }
 0x35e   : > { %v2411_v8 = vpop.f32.mrb[4].mxu1 }
 0x35f   : > { %v1474_v10 = vadd.f32 %v2411_v8, %v2227_v7  ;;  %v1468_v11 = vpop.f32.mrb[5].mxu1 }
 0x360   : > { %v1469_v12 = vadd.f32 %v2227_v7, %v1468_v11 }
 0x361   : > { %v1478_v13 = vmax.f32 %v1474_v10, 0.0  ;;  %2443 = vmatmul.mubr.msk.f32.vlgmr.msra.gmra.mrb[6].mxu1 %vm1620_vm9, %v1710_v9 }
 0x362   : > { %v1477_v14 = vmax.f32 %v1469_v12, 0.0  ;;  %2480 = vmatprep.mubr.msk.f32.mxu1 %vm2694_vm8, %v2692_v16  ;;  %2575 = vmatpush3.bf16.msra.mxu1 %v2574_v19  ;;  %v2580_v16 = vpack.c.bf16 %v1893_v23, %v1892_v22 }
 0x363   : > { %1979 = vst.msk [vmem:[#allocation4 + $0x8] sm:$0xff] %vm1027_vm4, %v1478_v13  ;;  %2576 = vmatprep.subr.bf16.mxu1 %v2693_v41 }
 0x364   : > { %1978 = vst.msk [vmem:[#allocation4] sm:$0xff] %vm1027_vm4, %v1477_v14 }
 0x366   : > { %2578 = vmatpush3.bf16.msra.mxu1 %v2577_v21 }
 0x367   : > { %2579 = vmatprep.subr.bf16.mxu1 %v2693_v41 }
 0x36a   : > { %2581 = vmatpush3.bf16.msra.mxu1 %v2580_v16 }
 0x36b   : > { %2582 = vmatprep.subr.bf16.mxu1 %v2693_v41 }
 0x36e   : > { %2584 = vmatpush3.bf16.msra.mxu1 %v2583_v28 }
 0x434   : > { %v1795_v24 = vpop.f32.mrb[6].mxu1 }
 0x435   : > { %v2444_v25 = vpop.f32.mrb[7].mxu1  ;;  %2462 = vmatmul.mubr.msk.f32.vlgmr.msra.gmra.mrb[6].mxu0 %vm1303_vm7, %v1795_v24 }
 0x508   : > { %v1883_v30 = vpop.f32.mrb[6].mxu0 }
 0x509   : > { %v1884_v31 = vadd.f32 %v2235_v29, %v1883_v30  ;;  %v2463_v32 = vpop.f32.mrb[7].mxu0 }
 0x50b   : > { %v1887_v33 = vmax.f32 %v1884_v31, 0.0 }
 0x50d   : > { %2481 = vmatmul.mubr.msk.f32.vlgmr.msra.gmra.mrb[8].mxu1 %vm1303_vm7, %v1887_v33 }
 0x50e   : > { %2636 = shalt.err (!%p2633_p12)
}
 0x50f   : > { %s3137_s27 = sld [smem:[#allocation22_spill]] }
 0x515   : > { %s2637_s1 = scalar_lea.hbm %s3137_s27, 256 }
 0x516   : > { %p2638_p13 = scmp.ne.s32.totalorder %s3137_s27, %s2637_s1  ;;  %p2643_p2 = scmp.lt.u32.totalorder %s2637_s1, %s3137_s27 }
 0x518   : > { %p2639_p0 = pnand %p2638_p13, %p2599_p5 }
 0x51a   : > { %p2640_p1 = pneg %p2639_p0 }
 0x51c   : > { %p2645_p3 = pnand %p2643_p2, %p2640_p1 }
 0x51e   : > { %2648 = shalt.err (!%p2645_p3)
}
 0x51f   : > { %s2696_s18 = smov 128   ;;  %s2697_s9 = smov 8   ;;  %v2237_v34 = vld [vmem:[%s811_s19] ss:$0 sm:$0xff] }
 0x520   : > { %2594 = dma.vmem_to_hbm [thread:$0]  (%p2599_p5), %s1998_s23, 256, %s3137_s27, [#allocation5], %s2696_s18, %s2696_s18, %s2697_s9  }
 0x521   : > { %s2698_s10 = smov [#allocation2]  }
 0x522   : > { %s1987_s22 = sshll.u32 %s2698_s10, 4  ;;  %s1988_s22 = int_to_ptr.vmem [resolvable:$true] %s1987_s22 }
 0x523   : > { %s2649_s0 = scalar_lea.vmem %s1988_s22, 128  ;;  %p2656_p8 = scmp.lt.s32.totalorder %s1988_s22, %s1988_s22 }
 0x524   : > { %p2650_p4 = scmp.ne.s32.totalorder %s1988_s22, %s2649_s0  ;;  %p2657_p9 = scmp.lt.s32.totalorder %s2649_s0, %s2649_s0 }
 0x526   : > { %p2651_p6 = pnand %p2650_p4, %p2599_p5  ;;  %p2658_p10 = por %p2657_p9, %p2656_p8 }
 0x528   : > { %p2652_p7 = pneg %p2651_p6 }
 0x52a   : > { %p2659_p11 = pnand %p2658_p10, %p2652_p7 }
 0x5e0   : > { %v1972_v35 = vpop.f32.mrb[8].mxu1 }
 0x5e1   : > { %v1973_v36 = vadd.f32 %v2237_v34, %v1972_v35  ;;  %v2482_v37 = vpop.f32.mrb[9].mxu1 }
 0x5e3   : > { %v1976_v38 = vmax.f32 %v1973_v36, 0.0 }
 0x5e5   : > { %1977 = vst.msk [vmem:[#allocation2] sm:$0xff] %vm1027_vm4, %v1976_v38 }
 0x5e6   : > { %2662 = shalt.err (!%p2659_p11)
}
 0x5e7   : > { %s3138_s23 = sld [smem:[#allocation21_spill]] }
 0x5ed   : > { %s2663_s28 = scalar_lea.hbm %s3138_s23, 128 }
 0x5ee   : > { %p2664_p12 = scmp.ne.s32.totalorder %s3138_s23, %s2663_s28  ;;  %p2669_p1 = scmp.lt.u32.totalorder %s2663_s28, %s3138_s23 }
 0x5f0   : > { %p2665_p13 = pnand %p2664_p12, %p2599_p5 }
 0x5f2   : > { %p2666_p0 = pneg %p2665_p13 }
 0x5f4   : > { %p2671_p2 = pnand %p2669_p1, %p2666_p0 }
 0x5f6   : > { %2674 = shalt.err (!%p2671_p2)
}
 0x5f7   : > { %2592 = dma.vmem_to_hbm [thread:$0]  (%p2599_p5), %s1988_s22, 128, %s3138_s23, [#allocation3]  }
 0x5f8   : > { %2680 = dma.done.wait (%p2599_p5), [#allocation3], 128  }
 0x5f9   : > { %2682 = vsyncadd (%p2599_p5), [#allocation3], 4294967168 }
 0x5fa   : > { %2684 = dma.done.wait (%p2599_p5), [#allocation5], 256  }
 0x5fb   : > { %2686 = vsyncadd (%p2599_p5), [#allocation5], 4294967040 }
 0x5fc PF: > { %s3139_s18 = sld [smem:[#allocation8_spill]] }
 0x602   : > { %s32_s0 = sadd.s32 1, %s3139_s18  }
 0x603   : > { %p29_p3 = scmp.ge.s32.totalorder %s32_s0, 4  }
 0x605   :  { %31 = sbr.rel (!%p29_p3) target bundleno = 16 (0x10), region = 170 }
 0x60c   :  { %2017 = vsyncpa [#allocation3], 1 }
 0x60d   :  { %2019 = vsyncpa [#allocation3 + $0x1], 1 }
 0x60e   :  { %2020 = vsyncpa [#allocation5], 1 }

</bundles_post_ra>
